<compile_context>
chip_gen: v5e
topology: v5e:2x2
jax: 0.10.0
libtpu: 0.0.40
codegen_flags: <defaults>
</compile_context>

<pallas_src>
import math
import jax
import jax.numpy as jnp
from jax.experimental import pallas as pl
from jax.experimental.pallas import tpu as pltpu


def _round_up(x, m):
    return ((x + m - 1) // m) * m


def _cdiv(a, b):
    return -(-a // b)


def _tpu_generation_params():
    """Returns (vmem_budget_bytes, vmem_limit_bytes, min_steps, even_grid)."""
    try:
        info = pltpu.get_tpu_info()
        vmem = getattr(info, "vmem_capacity_bytes", None)
    except Exception:
        vmem = None
    if vmem is not None and vmem >= 100 * 1024 * 1024:
        # 128 MiB parts (v5e / v6e): one TC, generous VMEM -> larger tiles.
        return 48 << 20, 64 << 20, 2, False
    if vmem is not None:
        # 64 MiB part (v7x): two TCs share the grid; tighter budget, even grid.
        return 24 << 20, 32 << 20, 4, True
    # Unknown part: conservative.
    return 24 << 20, 32 << 20, 2, False


def _pick_class_tile(emb, num_class, *, w_bytes, x_bytes, max_batch,
                     budget_bytes, min_steps):
    """Largest class tile whose full buffer set fits the VMEM budget.

    Budget counts: triple-buffered weight slab + double-buffered activations,
    bias/scale tiles and f32 output tile (sized for `max_batch`)."""
    cap = _round_up(num_class, 128)

    def fits(tn):
        weight = 3 * emb * tn * w_bytes            # streamed weight (<=3 buffers)
        x_db = 2 * max_batch * emb * x_bytes       # resident activations
        vec_db = 2 * 2 * tn * 4                    # bias + per-class scale tiles
        out_db = 2 * max_batch * tn * 4            # f32 logits tile
        return weight + x_db + vec_db + out_db <= budget_bytes

    # Tiny classifier: one grid step avoids all per-step overhead.
    if fits(cap):
        return cap

    # Must tile: keep at least `min_steps` grid steps for pipelining / megacore.
    step_cap = _round_up(_cdiv(num_class, min_steps), 128)
    for cand in (8192, 4096, 2048, 1024, 512, 256, 128):
        if cand <= step_cap and fits(cand):
            return cand
    return 128


def _weight_block_spec(emb, tn, *, triple_buffer):
    """Tile-major weight spec [steps, emb, tn]; each tile is one contiguous slab."""
    idx = lambda j: (j, 0, 0)
    if triple_buffer:
        try:
            return pl.BlockSpec((pl.Squeezed(), emb, tn), idx,
                                pipeline_mode=pl.Buffered(3))
        except (TypeError, AttributeError):
            pass  # older jax without pipeline_mode: default double-buffering
    return pl.BlockSpec((pl.Squeezed(), emb, tn), idx)


def _fc_kernel(x_ref, w_ref, s_ref, b_ref, o_ref):
    # x_ref: (B, emb) bf16 (resident)     w_ref: (emb, TN) int8 (streamed)
    # s_ref: (1, TN) f32 per-class scale  b_ref: (1, TN) f32 bias
    # o_ref: (B, TN) f32 logits
    w = w_ref[...].astype(jnp.bfloat16)   # VPU dequant cast, hidden under weight DMA
    acc = jnp.dot(x_ref[...], w, preferred_element_type=jnp.float32)
    o_ref[...] = acc * s_ref[...] + b_ref[...]


def fc_pallas(x, w_tiled, scale2d, bias2d, *, num_class, vmem_limit_bytes):
    """x: [B, emb] (any float dtype); w_tiled: [steps, emb, tn] int8 tile-major;
    scale2d/bias2d: [1, steps*tn] f32.  Returns [B, num_class] f32 logits."""
    B, emb = x.shape
    G, emb_w, tn = w_tiled.shape
    Cp = G * tn
    assert emb_w == emb
    assert scale2d.shape == (1, Cp) and bias2d.shape == (1, Cp)

    x_bf = x.astype(jnp.bfloat16)         # cast once, not per grid step

    cost = pl.CostEstimate(
        flops=2 * B * emb * Cp,
        transcendentals=0,
        bytes_accessed=(emb * Cp * 1        # streamed int8 weight (dominant)
                        + B * emb * 2       # bf16 activations
                        + 2 * Cp * 4        # bias + scale
                        + B * Cp * 4),      # f32 logits written back
    )

    out = pl.pallas_call(
        _fc_kernel,
        out_shape=jax.ShapeDtypeStruct((B, Cp), jnp.float32),   # force f32 logits
        grid_spec=pltpu.PrefetchScalarGridSpec(
            num_scalar_prefetch=0,
            grid=(G,),
            in_specs=[
                pl.BlockSpec((B, emb), lambda j: (0, 0)),        # x: resident
                _weight_block_spec(emb, tn, triple_buffer=(G >= 3)),
                pl.BlockSpec((1, tn), lambda j: (0, j)),         # per-class scale
                pl.BlockSpec((1, tn), lambda j: (0, j)),         # bias
            ],
            out_specs=pl.BlockSpec((B, tn), lambda j: (0, j)),
        ),
        compiler_params=pltpu.CompilerParams(
            dimension_semantics=("parallel",),
            vmem_limit_bytes=vmem_limit_bytes,
        ),
        cost_estimate=cost,
    )(x_bf, w_tiled, scale2d, bias2d)

    return out[:, :num_class] if num_class != Cp else out


class SoftmaxHead:
    """JAX/Pallas port of the PyTorch `Softmax` module (FC classification head).
    Like the original, no softmax is applied (CrossEntropyLoss does it)."""

    def __init__(self, emb_size, num_class, key, *, max_batch=256,
                 vmem_budget_bytes=None):
        kw, kb = jax.random.split(key)
        bound = 1.0 / math.sqrt(emb_size)
        # Master copies in PyTorch layout / f32 (mirrors nn.Linear default init).
        self.weight = jax.random.uniform(
            kw, (num_class, emb_size), jnp.float32, -bound, bound)
        self.bias = jax.random.uniform(
            kb, (num_class,), jnp.float32, -bound, bound)
        self.emb_size = emb_size
        self.num_class = num_class

        budget, vlimit, min_steps, even_grid = _tpu_generation_params()
        if vmem_budget_bytes is not None:
            budget = vmem_budget_bytes
        self.vmem_limit_bytes = vlimit

        self.tn = _pick_class_tile(
            emb_size, num_class, w_bytes=1, x_bytes=2, max_batch=max_batch,
            budget_bytes=budget, min_steps=min_steps)
        steps = _cdiv(num_class, self.tn)
        if even_grid and steps > 1 and steps % 2 == 1:
            steps += 1          # even grid -> both v7x TensorCores stay busy
        self.steps = steps
        padded = steps * self.tn

        # Hoisted, one-time preprocessing:
        #   transpose -> [emb, C], int8 per-output-channel symmetric quantization,
        #   pad classes, re-layout tile-major [steps, emb, tn].
        w_t = self.weight.T                                  # [emb, C]
        absmax = jnp.max(jnp.abs(w_t), axis=0)               # [C]
        scale = jnp.maximum(absmax, 1e-8) / 127.0            # [C] f32
        w_q = jnp.clip(jnp.round(w_t / scale[None, :]), -127, 127).astype(jnp.int8)
        self.weight_q = w_q                                  # kept for reference check
        self.scale = scale

        pad_c = padded - num_class
        w_q_p = jnp.pad(w_q, ((0, 0), (0, pad_c)))                       # [emb, Cp]
        self.weight_tiled = (w_q_p.reshape(emb_size, steps, self.tn)
                             .transpose(1, 0, 2))                        # [G, emb, tn]
        self.scale_p = jnp.pad(scale, (0, pad_c),
                               constant_values=1.0).reshape(1, padded)
        self.bias_p = jnp.pad(self.bias, (0, pad_c)).reshape(1, padded)

    def model(self, image):
        # Backbone placeholder: identity (image is already the embedding).
        return image

    def __call__(self, label, image):
        embedd = self.model(image)
        if label is None:
            return embedd
        return fc_pallas(embedd, self.weight_tiled, self.scale_p, self.bias_p,
                         num_class=self.num_class,
                         vmem_limit_bytes=self.vmem_limit_bytes)


if __name__ == "__main__":
    B, EMB, NUM_CLASS = 8, 128, 1000   # non-multiple of 128 exercises padding path

    key = jax.random.PRNGKey(0)
    k_img, k_params, k_lbl = jax.random.split(key, 3)

    image = jax.random.normal(k_img, (B, EMB), jnp.float32)   # "embedding" input
    label = jax.random.randint(k_lbl, (B,), 0, NUM_CLASS)     # only its None-ness matters

    def check(head):
        # Branch 1: label is None -> returns the embedding untouched.
        emb_out = head(None, image)
        assert emb_out.shape == (B, EMB)

        # Branch 2: label given -> fc(embedd) via the Pallas kernel.
        logits = jax.block_until_ready(head(label, image))
        assert logits.shape == (B, NUM_CLASS)
        assert logits.dtype == jnp.float32

        # Correctness check against a plain-JAX reference using the SAME
        # quantized operands the kernel consumes (int8 weight + per-class scale,
        # bf16-cast activations, f32 accumulation).  This validates the kernel,
        # not the quantization error vs the f32 master weights.
        x_used = image.astype(jnp.bfloat16).astype(jnp.float32)
        ref = (jnp.dot(x_used, head.weight_q.astype(jnp.float32),
                       precision=jax.lax.Precision.HIGHEST)
               * head.scale[None, :] + head.bias)
        assert jnp.allclose(logits, ref, atol=2e-3, rtol=2e-3), "mismatch vs reference"

    # Config 1: auto VMEM budget -> whole classifier in a single grid step.
    check(SoftmaxHead(EMB, NUM_CLASS, k_params))

    # Config 2: artificially tiny budget -> exercises the multi-tile streaming
    # path (tile-major weight DMA, triple-buffered weight spec, even grid).
    check(SoftmaxHead(EMB, NUM_CLASS, k_params,
                      max_batch=B, vmem_budget_bytes=192 * 1024))

    print("KERNEL_OK")
</pallas_src>

<mosaic_0001>
module attributes {stable_mosaic.version = 11 : i64} {
  func.func @_fc_kernel(%arg0: i32, %arg1: memref<8x128xbf16, #tpu.memory_space<vmem>>, %arg2: memref<1x128x1024xi8, #tpu.memory_space<vmem>>, %arg3: memref<1x1024xf32, #tpu.memory_space<vmem>>, %arg4: memref<1x1024xf32, #tpu.memory_space<vmem>>, %arg5: memref<8x1024xf32, #tpu.memory_space<vmem>>) attributes {dimension_semantics = [#tpu.dimension_semantics<parallel>], iteration_bounds = array<i64: 1>, scalar_prefetch = 0 : i64, scratch_operands = 0 : i64, tpu.core_type = #tpu.core_type<tc>, window_params = [{pipeline_mode = #tpu.pipeline_mode<synchronous>, transform_indices = @transform_0, window_bounds = array<i64: 8, 128>}, {transform_indices = @transform_1, window_bounds = array<i64: 1, 128, 1024>}, {transform_indices = @transform_2, window_bounds = array<i64: 1, 1024>}, {transform_indices = @transform_3, window_bounds = array<i64: 1, 1024>}, {transform_indices = @transform_4, window_bounds = array<i64: 8, 1024>}]} {
    %c0 = arith.constant 0 : index
    %c0_0 = arith.constant 0 : index
    %c0_1 = arith.constant 0 : index
    %0 = vector.load %arg2[%c0, %c0_0, %c0_1] : memref<1x128x1024xi8, #tpu.memory_space<vmem>>, vector<1x128x1024xi8>
    %1 = vector.shape_cast %0 : vector<1x128x1024xi8> to vector<128x1024xi8>
    %2 = arith.sitofp %1 : vector<128x1024xi8> to vector<128x1024xbf16>
    %c0_2 = arith.constant 0 : index
    %c0_3 = arith.constant 0 : index
    %3 = vector.load %arg1[%c0_2, %c0_3] : memref<8x128xbf16, #tpu.memory_space<vmem>>, vector<8x128xbf16>
    %cst = arith.constant dense<0.000000e+00> : vector<8x1024xf32>
    %4 = tpu.matmul %3, %2, %cst {dimension_numbers = #tpu.dot_dimension_numbers<[1], [0], [0], [1], [0, 0, 1, 1], [], []>} : vector<8x128xbf16>, vector<128x1024xbf16>, vector<8x1024xf32> -> vector<8x1024xf32>
    %c0_4 = arith.constant 0 : index
    %c0_5 = arith.constant 0 : index
    %5 = vector.load %arg3[%c0_4, %c0_5] : memref<1x1024xf32, #tpu.memory_space<vmem>>, vector<1x1024xf32>
    %6 = vector.broadcast %5 : vector<1x1024xf32> to vector<8x1024xf32>
    %7 = arith.mulf %4, %6 : vector<8x1024xf32>
    %c0_6 = arith.constant 0 : index
    %c0_7 = arith.constant 0 : index
    %8 = vector.load %arg4[%c0_6, %c0_7] : memref<1x1024xf32, #tpu.memory_space<vmem>>, vector<1x1024xf32>
    %9 = vector.broadcast %8 : vector<1x1024xf32> to vector<8x1024xf32>
    %10 = arith.addf %7, %9 : vector<8x1024xf32>
    %c0_8 = arith.constant 0 : index
    %c0_9 = arith.constant 0 : index
    %11 = vector.load %arg5[%c0_8, %c0_9] : memref<8x1024xf32, #tpu.memory_space<vmem>>, vector<8x1024xf32>
    tpu.vector_store %arg5[%c0_8, %c0_9], %10 {strides = array<i32>} : memref<8x1024xf32, #tpu.memory_space<vmem>>, vector<8x1024xf32>,
    return
  }
  func.func @transform_0(%arg0: i32) -> (i32, i32) {
    %c0_i32 = arith.constant 0 : i32
    %c0_i32_0 = arith.constant 0 : i32
    %c0_i32_1 = arith.constant 0 : i32
    return %c0_i32, %c0_i32_0 : i32, i32
  }
  func.func @transform_1(%arg0: i32) -> (i32, i32, i32) {
    %c0_i32 = arith.constant 0 : i32
    %c0_i32_0 = arith.constant 0 : i32
    %c0_i32_1 = arith.constant 0 : i32
    return %arg0, %c0_i32, %c0_i32_0 : i32, i32, i32
  }
  func.func @transform_2(%arg0: i32) -> (i32, i32) {
    %c0_i32 = arith.constant 0 : i32
    %c0_i32_0 = arith.constant 0 : i32
    return %c0_i32, %arg0 : i32, i32
  }
  func.func @transform_3(%arg0: i32) -> (i32, i32) {
    %c0_i32 = arith.constant 0 : i32
    %c0_i32_0 = arith.constant 0 : i32
    return %c0_i32, %arg0 : i32, i32
  }
  func.func @transform_4(%arg0: i32) -> (i32, i32) {
    %c0_i32 = arith.constant 0 : i32
    %c0_i32_0 = arith.constant 0 : i32
    return %c0_i32, %arg0 : i32, i32
  }
}

</mosaic_0001>

<bundles_post_ra>
// kernel: tpu_custom_call.1
= control target key start
LH: loop header
LB: loop body
LE: loop exit
PB: predicated region body
PF: predicated region fallthrough
CT: control target
= control target key end

     0   :  { %9 = vsyncpa [#allocation3], 0  ;;  %s803_s0 = inlined_call_operand.hbm [shape: bf16[8,128], index: 0, kind: input, shape index: {}]   ;;  %s804_s1 = inlined_call_operand.hbm [shape: s8[1,128,1024], index: 1, kind: input, shape index: {}]   ;;  %s805_s2 = inlined_call_operand.hbm [shape: f32[1,1024], index: 2, kind: input, shape index: {}]   ;;  %s806_s3 = inlined_call_operand.hbm [shape: f32[1,1024], index: 3, kind: input, shape index: {}]   ;;  %s807_s4 = inlined_call_operand.hbm [shape: f32[8,1024], index: 4, kind: output, shape index: {}]  }
   0x1   :  { %10 = vsyncpa [#allocation6], 0 }
   0x2   :  { %11 = vsyncpa [#allocation9], 0  ;;  %s28_s17 = sshll.u32 %s804_s1, 4  ;;  %s29_s17 = int_to_ptr.hbm [resolvable:$true] %s28_s17 }
   0x3   :  { %12 = vsyncpa [#allocation4], 0  ;;  %s746_s18 = smov [#allocation5]   ;;  %s18_s22 = sshll.u32 %s803_s0, 4  ;;  %s19_s22 = int_to_ptr.hbm [resolvable:$true] %s18_s22 }
   0x4   :  { %s30_s19 = sshll.u32 %s746_s18, 4  ;;  %s747_s23 = smov 1024   ;;  %s31_s19 = int_to_ptr.vmem [resolvable:$true] %s30_s19 }
   0x5   :  { %s748_s24 = smov 64   ;;  %s749_s25 = smov [#allocation2]  }
   0x6   :  { %36 = dma.hbm_to_vmem [thread:$0]  %s29_s17, 4096, %s31_s19, [#allocation6], %s747_s23, %s747_s23, %s748_s24  }
   0x7   :  { %s20_s26 = sshll.u32 %s749_s25, 4  ;;  %s42_s29 = sshll.u32 %s805_s2, 4  ;;  %s21_s26 = int_to_ptr.vmem [resolvable:$true] %s20_s26  ;;  %s43_s29 = int_to_ptr.hbm [resolvable:$true] %s42_s29 }
   0x8   :  { %23 = dma.hbm_to_vmem [thread:$0]  %s19_s22, 64, %s21_s26, [#allocation3]  }
   0x9   :  { %s53_s5 = sshll.u32 %s806_s3, 4  ;;  %s750_s6 = smov [#allocation7]   ;;  %s54_s5 = int_to_ptr.hbm [resolvable:$true] %s53_s5 }
   0xa   :  { %s44_s7 = sshll.u32 %s750_s6, 4  ;;  %s751_s0 = smov [#allocation8]   ;;  %s45_s7 = int_to_ptr.vmem [resolvable:$true] %s44_s7 }
   0xb   :  { %47 = dma.hbm_to_vmem [thread:$0]  %s43_s29, 128, %s45_s7, [#allocation6]  }
   0xc   :  { %s55_s8 = sshll.u32 %s751_s0, 4  ;;  %s56_s8 = int_to_ptr.vmem [resolvable:$true] %s55_s8 }
   0xd   :  { %58 = dma.hbm_to_vmem [thread:$0]  %s54_s5, 128, %s56_s8, [#allocation9]  }
   0xe   :  { %738 = dma.done.wait [#allocation3], 64  }
   0xf   :  { %739 = vsyncadd [#allocation3], 4294967232 }
  0x10   :  { %740 = dma.done.wait [#allocation6], 4224  }
  0x11   :  { %741 = vsyncadd [#allocation6], 4294963072 }
  0x12   :  { %742 = dma.done.wait [#allocation9], 128  }
  0x13   :  { %743 = vsyncadd [#allocation9], 4294967168  ;;  %v99_v0 = vld [vmem:[#allocation5 + $0xc0] sm:$0xff]  ;;  %v100_v1 = vld [vmem:[#allocation5 + $0xc8] sm:$0xff]  ;;  %s752_s2 = smov [#allocation10]   ;;  %s599_s11 = sshll.u32 %s807_s4, 4  ;;  %s600_s11 = int_to_ptr.hbm [resolvable:$true] %s599_s11 }
  0x14   :  { %v101_v2 = vld [vmem:[#allocation5 + $0xd0] sm:$0xff]  ;;  %v219_v3 = vunpack.c.2.s8 %v99_v0  ;;  %v227_v4 = vunpack.c.3.s8 %v99_v0  ;;  %v220_v5 = vunpack.c.2.s8 %v100_v1  ;;  %v228_v6 = vunpack.c.3.s8 %v100_v1  ;;  %v102_v7 = vld [vmem:[#allocation5 + $0xd8] sm:$0xff]  ;;  %v91_v28 = vld [vmem:[#allocation5 + $0x80] sm:$0xff]  ;;  %s597_s3 = sshll.u32 %s752_s2, 4  ;;  %s598_s3 = int_to_ptr.vmem [resolvable:$true] %s597_s3 }
  0x15   :  { %v221_v8 = vunpack.c.2.s8 %v101_v2  ;;  %v229_v9 = vunpack.c.3.s8 %v101_v2  ;;  %v222_v10 = vunpack.c.2.s8 %v102_v7  ;;  %v230_v11 = vunpack.c.3.s8 %v102_v7  ;;  %v92_v37 = vld [vmem:[#allocation5 + $0x88] sm:$0xff]  ;;  %v93_v42 = vld [vmem:[#allocation5 + $0x90] sm:$0xff]  ;;  %v94_v47 = vld [vmem:[#allocation5 + $0x98] sm:$0xff] }
  0x16   :  { %v347_v12 = vcvt.s32.f32 %v219_v3  ;;  %v355_v13 = vcvt.s32.f32 %v227_v4  ;;  %v348_v14 = vcvt.s32.f32 %v220_v5  ;;  %v356_v15 = vcvt.s32.f32 %v228_v6 }
  0x17   :  { %v349_v16 = vcvt.s32.f32 %v221_v8  ;;  %v357_v17 = vcvt.s32.f32 %v229_v9  ;;  %v350_v18 = vcvt.s32.f32 %v222_v10  ;;  %v358_v19 = vcvt.s32.f32 %v230_v11  ;;  %v83_v8 = vld [vmem:[#allocation5 + $0x40] sm:$0xff] }
  0x18   :  { %v419_v20 = vpack.c.bf16 %v355_v13, %v347_v12  ;;  %v420_v21 = vpack.c.bf16 %v356_v15, %v348_v14  ;;  %v203_v22 = vunpack.c.0.s8 %v99_v0  ;;  %v211_v23 = vunpack.c.1.s8 %v99_v0 }
  0x19   :  { %v421_v24 = vpack.c.bf16 %v357_v17, %v349_v16  ;;  %v422_v25 = vpack.c.bf16 %v358_v19, %v350_v18  ;;  %v204_v26 = vunpack.c.0.s8 %v100_v1  ;;  %v212_v27 = vunpack.c.1.s8 %v100_v1  ;;  %v84_v17 = vld [vmem:[#allocation5 + $0x48] sm:$0xff] }
  0x1a   :  { %428 = vmatpush.bf16.msra.mxu0 %v419_v20  ;;  %441 = vmatpush.bf16.msra.mxu1 %v420_v21  ;;  %v331_v29 = vcvt.s32.f32 %v203_v22  ;;  %v339_v30 = vcvt.s32.f32 %v211_v23  ;;  %v205_v31 = vunpack.c.0.s8 %v101_v2  ;;  %v213_v32 = vunpack.c.1.s8 %v101_v2  ;;  %v85_v22 = vld [vmem:[#allocation5 + $0x50] sm:$0xff] }
  0x1b   :  { %454 = vmatpush.bf16.msra.mxu2 %v421_v24  ;;  %467 = vmatpush.bf16.msra.mxu3 %v422_v25  ;;  %v332_v33 = vcvt.s32.f32 %v204_v26  ;;  %v340_v34 = vcvt.s32.f32 %v212_v27  ;;  %v206_v35 = vunpack.c.0.s8 %v102_v7  ;;  %v214_v36 = vunpack.c.1.s8 %v102_v7  ;;  %v86_v27 = vld [vmem:[#allocation5 + $0x58] sm:$0xff] }
  0x1c   :  { %v411_v38 = vpack.c.bf16 %v339_v30, %v331_v29  ;;  %v333_v39 = vcvt.s32.f32 %v205_v31  ;;  %v341_v40 = vcvt.s32.f32 %v213_v32  ;;  %v187_v41 = vunpack.c.2.s8 %v91_v28 }
  0x1d   :  { %v412_v43 = vpack.c.bf16 %v340_v34, %v332_v33  ;;  %v334_v44 = vcvt.s32.f32 %v206_v35  ;;  %v342_v45 = vcvt.s32.f32 %v214_v36  ;;  %v195_v46 = vunpack.c.3.s8 %v91_v28 }
  0x1e   :  { %429 = vmatpush.bf16.msra.mxu0 %v411_v38  ;;  %v413_v48 = vpack.c.bf16 %v341_v40, %v333_v39  ;;  %v315_v49 = vcvt.s32.f32 %v187_v41  ;;  %v188_v50 = vunpack.c.2.s8 %v92_v37  ;;  %v196_v51 = vunpack.c.3.s8 %v92_v37 }
  0x1f   :  { %442 = vmatpush.bf16.msra.mxu1 %v412_v43  ;;  %v414_v52 = vpack.c.bf16 %v342_v45, %v334_v44  ;;  %v323_v53 = vcvt.s32.f32 %v195_v46  ;;  %v189_v54 = vunpack.c.2.s8 %v93_v42  ;;  %v197_v55 = vunpack.c.3.s8 %v93_v42 }
  0x20   :  { %455 = vmatpush.bf16.msra.mxu2 %v413_v48  ;;  %v316_v56 = vcvt.s32.f32 %v188_v50  ;;  %v324_v57 = vcvt.s32.f32 %v196_v51  ;;  %v190_v58 = vunpack.c.2.s8 %v94_v47  ;;  %v198_v59 = vunpack.c.3.s8 %v94_v47 }
  0x21   :  { %468 = vmatpush.bf16.msra.mxu3 %v414_v52  ;;  %v403_v60 = vpack.c.bf16 %v323_v53, %v315_v49  ;;  %v317_v61 = vcvt.s32.f32 %v189_v54  ;;  %v325_v62 = vcvt.s32.f32 %v197_v55  ;;  %v171_v63 = vunpack.c.0.s8 %v91_v28  ;;  %v75_v52 = vld [vmem:[#allocation5] sm:$0xff] }
  0x22   :  { %v404_v0 = vpack.c.bf16 %v324_v57, %v316_v56  ;;  %v318_v1 = vcvt.s32.f32 %v190_v58  ;;  %v326_v2 = vcvt.s32.f32 %v198_v59  ;;  %v179_v3 = vunpack.c.1.s8 %v91_v28 }
  0x23   :  { %430 = vmatpush.bf16.msra.mxu0 %v403_v60  ;;  %v405_v4 = vpack.c.bf16 %v325_v62, %v317_v61  ;;  %v299_v5 = vcvt.s32.f32 %v171_v63  ;;  %v172_v6 = vunpack.c.0.s8 %v92_v37  ;;  %v180_v7 = vunpack.c.1.s8 %v92_v37  ;;  %v76_v61 = vld [vmem:[#allocation5 + $0x8] sm:$0xff] }
  0x24   :  { %443 = vmatpush.bf16.msra.mxu1 %v404_v0  ;;  %v406_v9 = vpack.c.bf16 %v326_v2, %v318_v1  ;;  %v307_v10 = vcvt.s32.f32 %v179_v3  ;;  %v173_v11 = vunpack.c.0.s8 %v93_v42  ;;  %v181_v12 = vunpack.c.1.s8 %v93_v42  ;;  %v77_v2 = vld [vmem:[#allocation5 + $0x10] sm:$0xff] }
  0x25   :  { %456 = vmatpush.bf16.msra.mxu2 %v405_v4  ;;  %v300_v13 = vcvt.s32.f32 %v172_v6  ;;  %v308_v14 = vcvt.s32.f32 %v180_v7  ;;  %v174_v15 = vunpack.c.0.s8 %v94_v47  ;;  %v182_v16 = vunpack.c.1.s8 %v94_v47  ;;  %v78_v7 = vld [vmem:[#allocation5 + $0x18] sm:$0xff] }
  0x26   :  { %469 = vmatpush.bf16.msra.mxu3 %v406_v9  ;;  %v395_v18 = vpack.c.bf16 %v307_v10, %v299_v5  ;;  %v301_v19 = vcvt.s32.f32 %v173_v11  ;;  %v309_v20 = vcvt.s32.f32 %v181_v12  ;;  %v155_v21 = vunpack.c.2.s8 %v83_v8 }
  0x27   :  { %v396_v23 = vpack.c.bf16 %v308_v14, %v300_v13  ;;  %v302_v24 = vcvt.s32.f32 %v174_v15  ;;  %v310_v25 = vcvt.s32.f32 %v182_v16  ;;  %v163_v26 = vunpack.c.3.s8 %v83_v8 }
  0x28   :  { %431 = vmatpush.bf16.msra.mxu0 %v395_v18  ;;  %v397_v28 = vpack.c.bf16 %v309_v20, %v301_v19  ;;  %v283_v29 = vcvt.s32.f32 %v155_v21  ;;  %v156_v30 = vunpack.c.2.s8 %v84_v17  ;;  %v164_v31 = vunpack.c.3.s8 %v84_v17 }
  0x29   :  { %444 = vmatpush.bf16.msra.mxu1 %v396_v23  ;;  %v398_v32 = vpack.c.bf16 %v310_v25, %v302_v24  ;;  %v291_v33 = vcvt.s32.f32 %v163_v26  ;;  %v157_v34 = vunpack.c.2.s8 %v85_v22  ;;  %v165_v35 = vunpack.c.3.s8 %v85_v22 }
  0x2a   :  { %457 = vmatpush.bf16.msra.mxu2 %v397_v28  ;;  %v284_v36 = vcvt.s32.f32 %v156_v30  ;;  %v292_v37 = vcvt.s32.f32 %v164_v31  ;;  %v158_v38 = vunpack.c.2.s8 %v86_v27  ;;  %v166_v39 = vunpack.c.3.s8 %v86_v27 }
  0x2b   :  { %470 = vmatpush.bf16.msra.mxu3 %v398_v32  ;;  %v387_v40 = vpack.c.bf16 %v291_v33, %v283_v29  ;;  %v285_v41 = vcvt.s32.f32 %v157_v34  ;;  %v293_v42 = vcvt.s32.f32 %v165_v35  ;;  %v139_v43 = vunpack.c.0.s8 %v83_v8  ;;  %v103_v32 = vld [vmem:[#allocation5 + $0xe0] sm:$0xff] }
  0x2c   :  { %v388_v44 = vpack.c.bf16 %v292_v37, %v284_v36  ;;  %v286_v45 = vcvt.s32.f32 %v158_v38  ;;  %v294_v46 = vcvt.s32.f32 %v166_v39  ;;  %v147_v47 = vunpack.c.1.s8 %v83_v8 }
  0x2d   :  { %432 = vmatpush.bf16.msra.mxu0 %v387_v40  ;;  %v389_v48 = vpack.c.bf16 %v293_v42, %v285_v41  ;;  %v267_v49 = vcvt.s32.f32 %v139_v43  ;;  %v140_v50 = vunpack.c.0.s8 %v84_v17  ;;  %v148_v51 = vunpack.c.1.s8 %v84_v17  ;;  %v104_v41 = vld [vmem:[#allocation5 + $0xe8] sm:$0xff] }
  0x2e   :  { %445 = vmatpush.bf16.msra.mxu1 %v388_v44  ;;  %v390_v53 = vpack.c.bf16 %v294_v46, %v286_v45  ;;  %v275_v54 = vcvt.s32.f32 %v147_v47  ;;  %v141_v55 = vunpack.c.0.s8 %v85_v22  ;;  %v149_v56 = vunpack.c.1.s8 %v85_v22  ;;  %v105_v46 = vld [vmem:[#allocation5 + $0xf0] sm:$0xff] }
  0x2f   :  { %458 = vmatpush.bf16.msra.mxu2 %v389_v48  ;;  %v268_v57 = vcvt.s32.f32 %v140_v50  ;;  %v276_v58 = vcvt.s32.f32 %v148_v51  ;;  %v142_v59 = vunpack.c.0.s8 %v86_v27  ;;  %v150_v60 = vunpack.c.1.s8 %v86_v27  ;;  %v106_v51 = vld [vmem:[#allocation5 + $0xf8] sm:$0xff] }
  0x30   :  { %471 = vmatpush.bf16.msra.mxu3 %v390_v53  ;;  %v379_v62 = vpack.c.bf16 %v275_v54, %v267_v49  ;;  %v269_v63 = vcvt.s32.f32 %v141_v55  ;;  %v277_v0 = vcvt.s32.f32 %v149_v56  ;;  %v123_v1 = vunpack.c.2.s8 %v75_v52 }
  0x31   :  { %v380_v3 = vpack.c.bf16 %v276_v58, %v268_v57  ;;  %v270_v4 = vcvt.s32.f32 %v142_v59  ;;  %v278_v5 = vcvt.s32.f32 %v150_v60  ;;  %v131_v6 = vunpack.c.3.s8 %v75_v52 }
  0x32   :  { %433 = vmatpush.bf16.msra.mxu0 %v379_v62  ;;  %v381_v8 = vpack.c.bf16 %v277_v0, %v269_v63  ;;  %v251_v9 = vcvt.s32.f32 %v123_v1  ;;  %v124_v10 = vunpack.c.2.s8 %v76_v61  ;;  %v132_v11 = vunpack.c.3.s8 %v76_v61  ;;  %v790_v0 = vld [vmem:[#allocation2] sm:$0xf] }
  0x33   :  { %446 = vmatpush.bf16.msra.mxu1 %v380_v3  ;;  %v382_v12 = vpack.c.bf16 %v278_v5, %v270_v4  ;;  %v259_v13 = vcvt.s32.f32 %v131_v6  ;;  %v125_v14 = vunpack.c.2.s8 %v77_v2  ;;  %v133_v15 = vunpack.c.3.s8 %v77_v2 }
  0x34   :  { %459 = vmatpush.bf16.msra.mxu2 %v381_v8  ;;  %v252_v16 = vcvt.s32.f32 %v124_v10  ;;  %v260_v17 = vcvt.s32.f32 %v132_v11  ;;  %v126_v18 = vunpack.c.2.s8 %v78_v7  ;;  %v134_v19 = vunpack.c.3.s8 %v78_v7 }
  0x35   :  { %472 = vmatpush.bf16.msra.mxu3 %v382_v12  ;;  %v371_v20 = vpack.c.bf16 %v259_v13, %v251_v9  ;;  %v253_v21 = vcvt.s32.f32 %v125_v14  ;;  %v261_v22 = vcvt.s32.f32 %v133_v15  ;;  %v107_v23 = vunpack.c.0.s8 %v75_v52  ;;  %v95_v13 = vld [vmem:[#allocation5 + $0xa0] sm:$0xff] }
  0x36   :  { %v372_v24 = vpack.c.bf16 %v260_v17, %v252_v16  ;;  %v254_v25 = vcvt.s32.f32 %v126_v18  ;;  %v262_v26 = vcvt.s32.f32 %v134_v19  ;;  %v115_v27 = vunpack.c.1.s8 %v75_v52 }
  0x37   :  { %434 = vmatpush.bf16.msra.mxu0 %v371_v20  ;;  %v373_v28 = vpack.c.bf16 %v261_v22, %v253_v21  ;;  %v235_v29 = vcvt.s32.f32 %v107_v23  ;;  %v108_v30 = vunpack.c.0.s8 %v76_v61  ;;  %v116_v31 = vunpack.c.1.s8 %v76_v61  ;;  %v96_v22 = vld [vmem:[#allocation5 + $0xa8] sm:$0xff] }
  0x38   :  { %447 = vmatpush.bf16.msra.mxu1 %v372_v24  ;;  %v374_v33 = vpack.c.bf16 %v262_v26, %v254_v25  ;;  %v243_v34 = vcvt.s32.f32 %v115_v27  ;;  %v109_v35 = vunpack.c.0.s8 %v77_v2  ;;  %v117_v36 = vunpack.c.1.s8 %v77_v2  ;;  %v97_v27 = vld [vmem:[#allocation5 + $0xb0] sm:$0xff] }
  0x39   :  { %460 = vmatpush.bf16.msra.mxu2 %v373_v28  ;;  %v236_v37 = vcvt.s32.f32 %v108_v30  ;;  %v244_v38 = vcvt.s32.f32 %v116_v31  ;;  %v110_v39 = vunpack.c.0.s8 %v78_v7  ;;  %v118_v40 = vunpack.c.1.s8 %v78_v7 }
  0x3a   :  { %473 = vmatpush.bf16.msra.mxu3 %v374_v33  ;;  %v363_v42 = vpack.c.bf16 %v243_v34, %v235_v29  ;;  %v237_v43 = vcvt.s32.f32 %v109_v35  ;;  %v245_v44 = vcvt.s32.f32 %v117_v36  ;;  %v223_v45 = vunpack.c.2.s8 %v103_v32 }
  0x3b   :  { %v364_v47 = vpack.c.bf16 %v244_v38, %v236_v37  ;;  %v238_v48 = vcvt.s32.f32 %v110_v39  ;;  %v246_v49 = vcvt.s32.f32 %v118_v40  ;;  %v231_v50 = vunpack.c.3.s8 %v103_v32 }
  0x3c   :  { %435 = vmatpush.bf16.msra.mxu0 %v363_v42  ;;  %v365_v52 = vpack.c.bf16 %v245_v44, %v237_v43  ;;  %v351_v53 = vcvt.s32.f32 %v223_v45  ;;  %v224_v54 = vunpack.c.2.s8 %v104_v41  ;;  %v232_v55 = vunpack.c.3.s8 %v104_v41 }
  0x3d   :  { %448 = vmatpush.bf16.msra.mxu1 %v364_v47  ;;  %v366_v56 = vpack.c.bf16 %v246_v49, %v238_v48  ;;  %v359_v57 = vcvt.s32.f32 %v231_v50  ;;  %v225_v58 = vunpack.c.2.s8 %v105_v46  ;;  %v233_v59 = vunpack.c.3.s8 %v105_v46 }
  0x3e   :  { %461 = vmatpush.bf16.msra.mxu2 %v365_v52  ;;  %v352_v60 = vcvt.s32.f32 %v224_v54  ;;  %v360_v61 = vcvt.s32.f32 %v232_v55  ;;  %v226_v62 = vunpack.c.2.s8 %v106_v51  ;;  %v234_v63 = vunpack.c.3.s8 %v106_v51 }
  0x3f   :  { %474 = vmatpush.bf16.msra.mxu3 %v366_v56  ;;  %v423_v1 = vpack.c.bf16 %v359_v57, %v351_v53  ;;  %v353_v2 = vcvt.s32.f32 %v225_v58  ;;  %v361_v3 = vcvt.s32.f32 %v233_v59  ;;  %v207_v4 = vunpack.c.0.s8 %v103_v32  ;;  %436 = vmatmul.bf16.vlgmr.msra.gmra.mxu0 %v790_v0  ;;  %v87_v57 = vld [vmem:[#allocation5 + $0x60] sm:$0xff] }
  0x40   :  { %v424_v5 = vpack.c.bf16 %v360_v61, %v352_v60  ;;  %v354_v6 = vcvt.s32.f32 %v226_v62  ;;  %v362_v7 = vcvt.s32.f32 %v234_v63  ;;  %v215_v8 = vunpack.c.1.s8 %v103_v32  ;;  %449 = vmatmul.bf16.vlgmr.msra.gmra.mxu1 %v790_v0  ;;  %v98_v32 = vld [vmem:[#allocation5 + $0xb8] sm:$0xff] }
  0x41   :  { %480 = vmatpush.bf16.msrb.mxu0 %v423_v1  ;;  %v425_v9 = vpack.c.bf16 %v361_v3, %v353_v2  ;;  %v335_v10 = vcvt.s32.f32 %v207_v4  ;;  %v208_v11 = vunpack.c.0.s8 %v104_v41  ;;  %v216_v12 = vunpack.c.1.s8 %v104_v41  ;;  %462 = vmatmul.bf16.vlgmr.msra.gmra.mxu2 %v790_v0  ;;  %v88_v3 = vld [vmem:[#allocation5 + $0x68] sm:$0xff] }
  0x42   :  { %493 = vmatpush.bf16.msrb.mxu1 %v424_v5  ;;  %v426_v14 = vpack.c.bf16 %v362_v7, %v354_v6  ;;  %v343_v15 = vcvt.s32.f32 %v215_v8  ;;  %v209_v16 = vunpack.c.0.s8 %v105_v46  ;;  %v217_v17 = vunpack.c.1.s8 %v105_v46  ;;  %475 = vmatmul.bf16.vlgmr.msra.gmra.mxu3 %v790_v0  ;;  %v89_v8 = vld [vmem:[#allocation5 + $0x70] sm:$0xff] }
  0x43   :  { %506 = vmatpush.bf16.msrb.mxu2 %v425_v9  ;;  %v336_v18 = vcvt.s32.f32 %v208_v11  ;;  %v344_v19 = vcvt.s32.f32 %v216_v12  ;;  %v210_v20 = vunpack.c.0.s8 %v106_v51  ;;  %v218_v21 = vunpack.c.1.s8 %v106_v51 }
  0x44   :  { %519 = vmatpush.bf16.msrb.mxu3 %v426_v14  ;;  %v415_v23 = vpack.c.bf16 %v343_v15, %v335_v10  ;;  %v337_v24 = vcvt.s32.f32 %v209_v16  ;;  %v345_v25 = vcvt.s32.f32 %v217_v17  ;;  %v191_v26 = vunpack.c.2.s8 %v95_v13 }
  0x45   :  { %v416_v28 = vpack.c.bf16 %v344_v19, %v336_v18  ;;  %v338_v29 = vcvt.s32.f32 %v210_v20  ;;  %v346_v30 = vcvt.s32.f32 %v218_v21  ;;  %v199_v31 = vunpack.c.3.s8 %v95_v13 }
  0x46   :  { %481 = vmatpush.bf16.msrb.mxu0 %v415_v23  ;;  %v417_v33 = vpack.c.bf16 %v345_v25, %v337_v24  ;;  %v319_v34 = vcvt.s32.f32 %v191_v26  ;;  %v192_v35 = vunpack.c.2.s8 %v96_v22  ;;  %v200_v36 = vunpack.c.3.s8 %v96_v22 }
  0x47   :  { %494 = vmatpush.bf16.msrb.mxu1 %v416_v28  ;;  %v418_v37 = vpack.c.bf16 %v346_v30, %v338_v29  ;;  %v327_v38 = vcvt.s32.f32 %v199_v31  ;;  %v193_v39 = vunpack.c.2.s8 %v97_v27  ;;  %v201_v40 = vunpack.c.3.s8 %v97_v27 }
  0x48   :  { %507 = vmatpush.bf16.msrb.mxu2 %v417_v33  ;;  %v320_v41 = vcvt.s32.f32 %v192_v35  ;;  %v328_v42 = vcvt.s32.f32 %v200_v36  ;;  %v194_v43 = vunpack.c.2.s8 %v98_v32  ;;  %v202_v44 = vunpack.c.3.s8 %v98_v32 }
  0x49   :  { %520 = vmatpush.bf16.msrb.mxu3 %v418_v37  ;;  %v407_v45 = vpack.c.bf16 %v327_v38, %v319_v34  ;;  %v321_v46 = vcvt.s32.f32 %v193_v39  ;;  %v329_v47 = vcvt.s32.f32 %v201_v40  ;;  %v175_v48 = vunpack.c.0.s8 %v95_v13  ;;  %v79_v38 = vld [vmem:[#allocation5 + $0x20] sm:$0xff] }
  0x4a   :  { %v408_v49 = vpack.c.bf16 %v328_v42, %v320_v41  ;;  %v322_v50 = vcvt.s32.f32 %v194_v43  ;;  %v330_v51 = vcvt.s32.f32 %v202_v44  ;;  %v183_v52 = vunpack.c.1.s8 %v95_v13  ;;  %v90_v13 = vld [vmem:[#allocation5 + $0x78] sm:$0xff] }
  0x4b   :  { %482 = vmatpush.bf16.msrb.mxu0 %v407_v45  ;;  %v409_v53 = vpack.c.bf16 %v329_v47, %v321_v46  ;;  %v303_v54 = vcvt.s32.f32 %v175_v48  ;;  %v176_v55 = vunpack.c.0.s8 %v96_v22  ;;  %v184_v56 = vunpack.c.1.s8 %v96_v22  ;;  %v80_v47 = vld [vmem:[#allocation5 + $0x28] sm:$0xff] }
  0x4c   :  { %495 = vmatpush.bf16.msrb.mxu1 %v408_v49  ;;  %v410_v58 = vpack.c.bf16 %v330_v51, %v322_v50  ;;  %v311_v59 = vcvt.s32.f32 %v183_v52  ;;  %v177_v60 = vunpack.c.0.s8 %v97_v27  ;;  %v185_v61 = vunpack.c.1.s8 %v97_v27  ;;  %v81_v52 = vld [vmem:[#allocation5 + $0x30] sm:$0xff] }
  0x4d   :  { %508 = vmatpush.bf16.msrb.mxu2 %v409_v53  ;;  %v304_v62 = vcvt.s32.f32 %v176_v55  ;;  %v312_v63 = vcvt.s32.f32 %v184_v56  ;;  %v178_v1 = vunpack.c.0.s8 %v98_v32  ;;  %v186_v2 = vunpack.c.1.s8 %v98_v32 }
  0x4e   :  { %521 = vmatpush.bf16.msrb.mxu3 %v410_v58  ;;  %v399_v4 = vpack.c.bf16 %v311_v59, %v303_v54  ;;  %v305_v5 = vcvt.s32.f32 %v177_v60  ;;  %v313_v6 = vcvt.s32.f32 %v185_v61  ;;  %v159_v7 = vunpack.c.2.s8 %v87_v57 }
  0x4f   :  { %v400_v9 = vpack.c.bf16 %v312_v63, %v304_v62  ;;  %v306_v10 = vcvt.s32.f32 %v178_v1  ;;  %v314_v11 = vcvt.s32.f32 %v186_v2  ;;  %v167_v12 = vunpack.c.3.s8 %v87_v57 }
  0x50   :  { %483 = vmatpush.bf16.msrb.mxu0 %v399_v4  ;;  %v401_v14 = vpack.c.bf16 %v313_v6, %v305_v5  ;;  %v287_v15 = vcvt.s32.f32 %v159_v7  ;;  %v160_v16 = vunpack.c.2.s8 %v88_v3  ;;  %v168_v17 = vunpack.c.3.s8 %v88_v3 }
  0x51   :  { %496 = vmatpush.bf16.msrb.mxu1 %v400_v9  ;;  %v402_v18 = vpack.c.bf16 %v314_v11, %v306_v10  ;;  %v295_v19 = vcvt.s32.f32 %v167_v12  ;;  %v161_v20 = vunpack.c.2.s8 %v89_v8  ;;  %v169_v21 = vunpack.c.3.s8 %v89_v8 }
  0x52   :  { %509 = vmatpush.bf16.msrb.mxu2 %v401_v14  ;;  %v288_v22 = vcvt.s32.f32 %v160_v16  ;;  %v296_v23 = vcvt.s32.f32 %v168_v17  ;;  %v162_v24 = vunpack.c.2.s8 %v90_v13  ;;  %v170_v25 = vunpack.c.3.s8 %v90_v13 }
  0x53   :  { %522 = vmatpush.bf16.msrb.mxu3 %v402_v18  ;;  %v391_v26 = vpack.c.bf16 %v295_v19, %v287_v15  ;;  %v289_v27 = vcvt.s32.f32 %v161_v20  ;;  %v297_v28 = vcvt.s32.f32 %v169_v21  ;;  %v143_v29 = vunpack.c.0.s8 %v87_v57 }
  0x54   :  { %v392_v30 = vpack.c.bf16 %v296_v23, %v288_v22  ;;  %v290_v31 = vcvt.s32.f32 %v162_v24  ;;  %v298_v32 = vcvt.s32.f32 %v170_v25  ;;  %v151_v33 = vunpack.c.1.s8 %v87_v57  ;;  %v82_v57 = vld [vmem:[#allocation5 + $0x38] sm:$0xff] }
  0x55   :  { %484 = vmatpush.bf16.msrb.mxu0 %v391_v26  ;;  %v393_v34 = vpack.c.bf16 %v297_v28, %v289_v27  ;;  %v271_v35 = vcvt.s32.f32 %v143_v29  ;;  %v144_v36 = vunpack.c.0.s8 %v88_v3  ;;  %v152_v37 = vunpack.c.1.s8 %v88_v3 }
  0x56   :  { %497 = vmatpush.bf16.msrb.mxu1 %v392_v30  ;;  %v394_v39 = vpack.c.bf16 %v298_v32, %v290_v31  ;;  %v279_v40 = vcvt.s32.f32 %v151_v33  ;;  %v145_v41 = vunpack.c.0.s8 %v89_v8  ;;  %v153_v42 = vunpack.c.1.s8 %v89_v8 }
  0x57   :  { %510 = vmatpush.bf16.msrb.mxu2 %v393_v34  ;;  %v272_v43 = vcvt.s32.f32 %v144_v36  ;;  %v280_v44 = vcvt.s32.f32 %v152_v37  ;;  %v146_v45 = vunpack.c.0.s8 %v90_v13  ;;  %v154_v46 = vunpack.c.1.s8 %v90_v13  ;;  %v558_v36 = vld [vmem:[#allocation8] sm:$0xff] }
  0x58   :  { %523 = vmatpush.bf16.msrb.mxu3 %v394_v39  ;;  %v383_v48 = vpack.c.bf16 %v279_v40, %v271_v35  ;;  %v273_v49 = vcvt.s32.f32 %v145_v41  ;;  %v281_v50 = vcvt.s32.f32 %v153_v42  ;;  %v127_v51 = vunpack.c.2.s8 %v79_v38  ;;  %v532_v35 = vld [vmem:[#allocation7] sm:$0xff] }
  0x59   :  { %v384_v53 = vpack.c.bf16 %v280_v44, %v272_v43  ;;  %v274_v54 = vcvt.s32.f32 %v146_v45  ;;  %v282_v55 = vcvt.s32.f32 %v154_v46  ;;  %v135_v56 = vunpack.c.3.s8 %v79_v38 }
  0x5a   :  { %485 = vmatpush.bf16.msrb.mxu0 %v383_v48  ;;  %v385_v58 = vpack.c.bf16 %v281_v50, %v273_v49  ;;  %v255_v59 = vcvt.s32.f32 %v127_v51  ;;  %v128_v60 = vunpack.c.2.s8 %v80_v47  ;;  %v136_v61 = vunpack.c.3.s8 %v80_v47 }
  0x5b   :  { %498 = vmatpush.bf16.msrb.mxu1 %v384_v53  ;;  %v386_v62 = vpack.c.bf16 %v282_v55, %v274_v54  ;;  %v263_v63 = vcvt.s32.f32 %v135_v56  ;;  %v129_v1 = vunpack.c.2.s8 %v81_v52  ;;  %v137_v2 = vunpack.c.3.s8 %v81_v52 }
  0x5c   :  { %511 = vmatpush.bf16.msrb.mxu2 %v385_v58  ;;  %v256_v3 = vcvt.s32.f32 %v128_v60  ;;  %v264_v4 = vcvt.s32.f32 %v136_v61  ;;  %v130_v5 = vunpack.c.2.s8 %v82_v57  ;;  %v138_v6 = vunpack.c.3.s8 %v82_v57 }
  0x5d   :  { %524 = vmatpush.bf16.msrb.mxu3 %v386_v62  ;;  %v375_v7 = vpack.c.bf16 %v263_v63, %v255_v59  ;;  %v257_v8 = vcvt.s32.f32 %v129_v1  ;;  %v265_v9 = vcvt.s32.f32 %v137_v2  ;;  %v111_v10 = vunpack.c.0.s8 %v79_v38 }
  0x5e   :  { %v376_v11 = vpack.c.bf16 %v264_v4, %v256_v3  ;;  %v258_v12 = vcvt.s32.f32 %v130_v5  ;;  %v266_v13 = vcvt.s32.f32 %v138_v6  ;;  %v119_v14 = vunpack.c.1.s8 %v79_v38 }
  0x5f   :  { %486 = vmatpush.bf16.msrb.mxu0 %v375_v7  ;;  %v377_v15 = vpack.c.bf16 %v265_v9, %v257_v8  ;;  %v239_v16 = vcvt.s32.f32 %v111_v10  ;;  %v112_v17 = vunpack.c.0.s8 %v80_v47  ;;  %v120_v18 = vunpack.c.1.s8 %v80_v47 }
  0x60   :  { %499 = vmatpush.bf16.msrb.mxu1 %v376_v11  ;;  %v378_v19 = vpack.c.bf16 %v266_v13, %v258_v12  ;;  %v247_v20 = vcvt.s32.f32 %v119_v14  ;;  %v113_v21 = vunpack.c.0.s8 %v81_v52  ;;  %v121_v22 = vunpack.c.1.s8 %v81_v52 }
  0x61   :  { %512 = vmatpush.bf16.msrb.mxu2 %v377_v15  ;;  %v240_v23 = vcvt.s32.f32 %v112_v17  ;;  %v248_v24 = vcvt.s32.f32 %v120_v18  ;;  %v114_v25 = vunpack.c.0.s8 %v82_v57  ;;  %v122_v26 = vunpack.c.1.s8 %v82_v57 }
  0x62   :  { %525 = vmatpush.bf16.msrb.mxu3 %v378_v19  ;;  %v367_v27 = vpack.c.bf16 %v247_v20, %v239_v16  ;;  %v241_v28 = vcvt.s32.f32 %v113_v21  ;;  %v249_v29 = vcvt.s32.f32 %v121_v22  ;;  %v534_v37 = vperm.slane %v532_v35, 0 }
  0x63   :  { %v368_v30 = vpack.c.bf16 %v248_v24, %v240_v23  ;;  %v242_v31 = vcvt.s32.f32 %v114_v25  ;;  %v250_v32 = vcvt.s32.f32 %v122_v26  ;;  %v535_v38 = vperm.slane %v532_v35, 1 }
  0x64   :  { %487 = vmatpush.bf16.msrb.mxu0 %v367_v27  ;;  %v369_v33 = vpack.c.bf16 %v249_v29, %v241_v28  ;;  %v560_v39 = vperm.slane %v558_v36, 0  ;;  %v561_v41 = vperm.slane %v558_v36, 1  ;;  %v536_v47 = vperm.slane %v532_v35, 2 }
  0x65   :  { %500 = vmatpush.bf16.msrb.mxu1 %v368_v30  ;;  %v370_v34 = vpack.c.bf16 %v250_v32, %v242_v31  ;;  %v537_v48 = vperm.slane %v532_v35, 3  ;;  %v562_v49 = vperm.slane %v558_v36, 2  ;;  %v563_v51 = vperm.slane %v558_v36, 3 }
  0x66   :  { %513 = vmatpush.bf16.msrb.mxu2 %v369_v33  ;;  %v538_v60 = vperm.slane %v532_v35, 4  ;;  %v539_v61 = vperm.slane %v532_v35, 5  ;;  %v564_v62 = vperm.slane %v558_v36, 4  ;;  %v565_v1 = vperm.slane %v558_v36, 5 }
  0x67   :  { %526 = vmatpush.bf16.msrb.mxu3 %v370_v34  ;;  %488 = vmatmul.bf16.vlgmr.msrb.gmra.mxu0 %v790_v0  ;;  %v540_v7 = vperm.slane %v532_v35, 6  ;;  %v541_v8 = vperm.slane %v532_v35, 7  ;;  %v566_v9 = vperm.slane %v558_v36, 6  ;;  %v567_v11 = vperm.slane %v558_v36, 7 }
  0x68   :  { %501 = vmatmul.bf16.vlgmr.msrb.gmra.mxu1 %v790_v0 }
  0x69   :  { %514 = vmatmul.bf16.vlgmr.msrb.gmra.mxu2 %v790_v0 }
  0x6a   :  { %527 = vmatmul.bf16.vlgmr.msrb.gmra.mxu3 %v790_v0 }
  0xbc   :  { %v437_v40 = vpop.f32.mrf.mxu0 }
  0xbd   :  { %v550_v42 = vmul.f32 %v534_v37, %v437_v40  ;;  %v450_v43 = vpop.f32.mrf.mxu1 }
  0xbe   :  { %v551_v44 = vmul.f32 %v535_v38, %v450_v43 }
  0xbf   :  { %v576_v45 = vadd.f32 %v560_v39, %v550_v42 }
  0xc0   :  { %v577_v46 = vadd.f32 %v561_v41, %v551_v44 }
  0xc1   :  { %584 = vst [vmem:[#allocation10] sm:$0xff] %v576_v45 }
  0xc2   :  { %585 = vst [vmem:[#allocation10 + $0x8] sm:$0xff] %v577_v46 }
  0xc4   :  { %v463_v50 = vpop.f32.mrf.mxu2  ;;  %v439_v0 = vpop.f32.mrf.mxu0 }
  0xc5   :  { %v552_v52 = vmul.f32 %v536_v47, %v463_v50  ;;  %v476_v53 = vpop.f32.mrf.mxu3  ;;  %v452_v54 = vpop.f32.mrf.mxu1 }
  0xc6   :  { %v553_v55 = vmul.f32 %v537_v48, %v476_v53 }
  0xc7   :  { %v578_v56 = vadd.f32 %v562_v49, %v552_v52 }
  0xc8   :  { %v579_v57 = vadd.f32 %v563_v51, %v553_v55 }
  0xc9   :  { %586 = vst [vmem:[#allocation10 + $0x10] sm:$0xff] %v578_v56 }
  0xca   :  { %587 = vst [vmem:[#allocation10 + $0x18] sm:$0xff] %v579_v57 }
  0xcc   :  { %v465_v58 = vpop.f32.mrf.mxu2 }
  0xcd   :  { %v478_v59 = vpop.f32.mrf.mxu3 }
  0xe4   :  { %v489_v63 = vpop.f32.mrf.mxu0 }
  0xe5   :  { %v554_v2 = vmul.f32 %v538_v60, %v489_v63  ;;  %v502_v3 = vpop.f32.mrf.mxu1 }
  0xe6   :  { %v555_v4 = vmul.f32 %v539_v61, %v502_v3 }
  0xe7   :  { %v580_v5 = vadd.f32 %v564_v62, %v554_v2 }
  0xe8   :  { %v581_v6 = vadd.f32 %v565_v1, %v555_v4 }
  0xe9   :  { %588 = vst [vmem:[#allocation10 + $0x20] sm:$0xff] %v580_v5 }
  0xea   :  { %589 = vst [vmem:[#allocation10 + $0x28] sm:$0xff] %v581_v6 }
  0xec   :  { %v515_v10 = vpop.f32.mrf.mxu2  ;;  %v491_v12 = vpop.f32.mrf.mxu0 }
  0xed   :  { %v556_v13 = vmul.f32 %v540_v7, %v515_v10  ;;  %v528_v14 = vpop.f32.mrf.mxu3  ;;  %v504_v15 = vpop.f32.mrf.mxu1 }
  0xee   :  { %v557_v16 = vmul.f32 %v541_v8, %v528_v14 }
  0xef   :  { %v582_v17 = vadd.f32 %v566_v9, %v556_v13 }
  0xf0   :  { %v583_v18 = vadd.f32 %v567_v11, %v557_v16 }
  0xf1   :  { %590 = vst [vmem:[#allocation10 + $0x30] sm:$0xff] %v582_v17 }
  0xf2   :  { %591 = vst [vmem:[#allocation10 + $0x38] sm:$0xff] %v583_v18 }
  0xf3   :  { %602 = dma.vmem_to_hbm [thread:$0]  %s598_s3, 1024, %s600_s11, [#allocation4]  }
  0xf4   :  { %v517_v19 = vpop.f32.mrf.mxu2 }
  0xf5   :  { %v530_v20 = vpop.f32.mrf.mxu3 }
  0xf6   :  { %744 = dma.done.wait [#allocation4], 1024  }
  0xf7   :  { %745 = vsyncadd [#allocation4], 4294966272 }
  0xf8   :  { %607 = vsyncpa [#allocation3], 1 }
  0xf9   :  { %608 = vsyncpa [#allocation6], 1 }
  0xfa   :  { %609 = vsyncpa [#allocation9], 1 }
  0xfb   :  { %610 = vsyncpa [#allocation4], 1 }

</bundles_post_ra>
